<compile_context>
chip_gen: v6e
topology: v6e:2x2x1
jax: 0.10.0
libtpu: 0.0.40
codegen_flags: <defaults>
</compile_context>

<pallas_src>
import functools

import numpy as np
import jax
import jax.numpy as jnp
from jax.experimental import pallas as pl
from jax.experimental.pallas import tpu as pltpu

EPS = 1e-5   # torch.nn.InstanceNorm2d default eps

_PARAM_ORDER = ("w1", "b1", "lk_w", "lk_b", "c2_w", "c2_b", "wsca", "bsca",
                "c0_w", "c0_b", "cs_w", "cs_b", "wc1", "bc1",
                "w3", "b3", "w4", "b4", "beta")


def _gelu(x):
    # TODO(synk): torch.nn.GELU() default is the exact erf form; the tanh form
    # (== nn.GELU(approximate='tanh'), |err| ~1e-3) is used here so the
    # transcendental lowers to the otherwise-idle EUP slot.
    c = 0.7978845608028654  # sqrt(2/pi)
    return 0.5 * x * (1.0 + jnp.tanh(c * (x + 0.044715 * x * x * x)))


# -----------------------------------------------------------------------------
# pltpu.roll rotate-direction probe (cached; run once outside any jit trace so
# the tap-shift sign below is robust across jax versions).
# -----------------------------------------------------------------------------
_ROLL_MATCHES_NP = None


def _roll_matches_np():
    global _ROLL_MATCHES_NP
    if _ROLL_MATCHES_NP is None:
        x = jnp.asarray(np.arange(8 * 128, dtype=np.float32).reshape(8, 128))

        def k(x_ref, o_ref):
            o_ref[...] = pltpu.roll(x_ref[...], 1, axis=1)

        y = pl.pallas_call(
            k, out_shape=jax.ShapeDtypeStruct((8, 128), jnp.float32))(x)
        _ROLL_MATCHES_NP = bool(y[0, 0] == x[0, 127])   # np.roll convention?
    return _ROLL_MATCHES_NP


# -----------------------------------------------------------------------------
# Single fused kernel: one grid step == one batch element, everything in VMEM.
# -----------------------------------------------------------------------------
def _large_kernel_fused(x_ref, rc_ref,
                        w1_ref, b1_ref, lkw_ref, lkb_ref, c2w_ref, c2b_ref,
                        wsca_ref, bsca_ref, c0w_ref, c0b_ref, csw_ref, csb_ref,
                        wc1_ref, bc1_ref, w3_ref, b3_ref, w4_ref, b4_ref,
                        beta_ref, o_ref, *, H, W):
    HW = H * W
    roll_np = _ROLL_MATCHES_NP if _ROLL_MATCHES_NP is not None else True

    x = x_ref[0]                                         # (C, HW)
    row = rc_ref[0:1, :]                                 # (1, HW) int32: p // W
    col = rc_ref[1:2, :]                                 # (1, HW) int32: p %  W

    def dw_conv(z, w_ref_, b_ref_, K, dil):
        """Depthwise KxK 'same' conv (groups == channels) on a (Cg, HW) slab.

        Each tap is a lane shift (pltpu.roll, XLU) of the flattened image plus
        a row/col halo mask; per-channel tap weights broadcast along lanes.
        w_ref_: (Cg, K*K) with tap index ki*K + kj;  b_ref_: (Cg, 1).
        """
        c = K // 2
        acc = None
        for ki in range(K):
            for kj in range(K):
                di = (ki - c) * dil
                dj = (kj - c) * dil
                s = di * W + dj                          # flattened tap offset
                if s == 0:
                    t = z
                else:
                    shift = (-s) % HW if roll_np else s % HW
                    t = pltpu.roll(z, shift, axis=1)     # t[p] = z[p + s]
                conds = []
                if di < 0:
                    conds.append(row >= -di)
                if di > 0:
                    conds.append(row < H - di)
                if dj < 0:
                    conds.append(col >= -dj)
                if dj > 0:
                    conds.append(col < W - dj)
                if conds:
                    m = conds[0]
                    for extra in conds[1:]:
                        m = m & extra
                    t = jnp.where(m, t, 0.0)             # zero-padding halo
                tap = w_ref_[:, ki * K + kj:ki * K + kj + 1]   # (Cg, 1)
                term = tap * t
                acc = term if acc is None else acc + term
        return acc + b_ref_[...]

    def inst_norm(t):                                    # InstanceNorm2d (affine=False)
        mu = jnp.mean(t, axis=1, keepdims=True)
        var = jnp.mean((t - mu) ** 2, axis=1, keepdims=True)
        return (t - mu) * jax.lax.rsqrt(var + EPS)

    # ---- bn -> conv1 (1x1, C -> 2C) ----
    y = (jnp.dot(w1_ref[...], inst_norm(x), preferred_element_type=jnp.float32)
         + b1_ref[...])                                  # (2C, HW)

    # ---- lk (dw 3x3) -> conv2 (dw 3x3) -> GELU ----
    y = dw_conv(y, lkw_ref, lkb_ref, 3, 1)
    y = dw_conv(y, c2w_ref, c2b_ref, 3, 1)
    g = _gelu(y)                                         # (2C, HW)

    # ---- CSA ----
    # sca = Conv1x1(AdaptiveAvgPool2d(1)(g)) * g.  The projection is kept as a
    # single wide MXU matmul followed by the lane mean (identical by linearity,
    # negligible MACs, avoids a degenerate N=1 matmul shape).
    proj = jnp.dot(wsca_ref[...], g, preferred_element_type=jnp.float32)
    v = jnp.mean(proj, axis=1, keepdims=True) + bsca_ref[...]     # (2C, 1)
    sca = v * g                                          # (2C, HW)
    mx = jnp.max(sca, axis=0, keepdims=True)             # (1, HW)
    mn = jnp.mean(sca, axis=0, keepdims=True)            # (1, HW)
    s = jnp.concatenate([mx, mn], axis=0)                # (2, HW)
    s = dw_conv(s, c0w_ref, c0b_ref, 5, 1)               # conv0:        dw 5x5, pad 2
    s = dw_conv(s, csw_ref, csb_ref, 5, 3)               # conv_spatial: dw 5x5, dil 3, pad 6
    att = (jnp.sum(wc1_ref[...] * s, axis=0, keepdims=True)
           + bc1_ref[...])                               # csa.conv1: 1x1, 2 -> 1
    o = att * sca                                        # (2C, HW)

    # ---- bn2 -> conv3 -> GELU -> conv4 ----
    on = inst_norm(o)
    h = _gelu(jnp.dot(w3_ref[...], on, preferred_element_type=jnp.float32)
              + b3_ref[...])                             # (2C, HW)
    z = (jnp.dot(w4_ref[...], h, preferred_element_type=jnp.float32)
         + b4_ref[...])                                  # (C, HW)

    # ---- dropout1 == Identity (rate 0.0); residual with beta scale ----
    o_ref[0] = x + beta_ref[...] * z


def large_kernel_forward(x, p):
    N, C, H, W = x.shape
    HW = H * W

    x_flat = x.reshape(N, C, HW)                         # metadata-only reshape
    pos = np.arange(HW)
    rowcol = jnp.asarray(np.stack([pos // W, pos % W]).astype(np.int32))  # (2, HW)

    def rep(arr):                                        # grid-invariant operand
        nd = arr.ndim
        return pl.BlockSpec(arr.shape, lambda n: (0,) * nd)

    kern = functools.partial(_large_kernel_fused, H=H, W=W)
    out_flat = pl.pallas_call(
        kern,
        out_shape=jax.ShapeDtypeStruct((N, C, HW), jnp.float32),
        grid=(N,),
        in_specs=[pl.BlockSpec((1, C, HW), lambda n: (n, 0, 0)),
                  rep(rowcol)] + [rep(p[k]) for k in _PARAM_ORDER],
        out_specs=pl.BlockSpec((1, C, HW), lambda n: (n, 0, 0)),
        compiler_params=pltpu.CompilerParams(
            dimension_semantics=("parallel",)),          # v7x: one sample per TC
    )(x_flat, rowcol, *[p[k] for k in _PARAM_ORDER])
    return out_flat.reshape(N, C, H, W)


# -----------------------------------------------------------------------------
# Pure-JAX/XLA reference of the same forward pass (for self-checking).
# -----------------------------------------------------------------------------
def large_kernel_reference(x, p):
    N, C, H, W = x.shape
    Co = 2 * C
    hi = jax.lax.Precision.HIGHEST

    def inst_norm(t):
        mu = t.mean(axis=(2, 3), keepdims=True)
        var = ((t - mu) ** 2).mean(axis=(2, 3), keepdims=True)
        return (t - mu) * jax.lax.rsqrt(var + EPS)

    def pw(t, w, b):                                     # 1x1 conv
        y = jnp.einsum("oc,nchw->nohw", w, t, precision=hi)
        return y + b.reshape(1, -1, 1, 1)

    def dw(t, w, b, K, dil, pad):                        # depthwise conv
        Cg = t.shape[1]
        y = jax.lax.conv_general_dilated(
            t, w.reshape(Cg, 1, K, K), window_strides=(1, 1),
            padding=((pad, pad), (pad, pad)), rhs_dilation=(dil, dil),
            dimension_numbers=("NCHW", "OIHW", "NCHW"),
            feature_group_count=Cg, precision=hi)
        return y + b.reshape(1, Cg, 1, 1)

    out = pw(inst_norm(x), p["w1"], p["b1"])
    out = dw(out, p["lk_w"], p["lk_b"], 3, 1, 1)
    out = dw(out, p["c2_w"], p["c2_b"], 3, 1, 1)
    g = _gelu(out)

    gbar = g.mean(axis=(2, 3))                                           # (N, 2C)
    v = (jnp.einsum("oc,nc->no", p["wsca"], gbar, precision=hi)
         + p["bsca"].reshape(1, Co))[:, :, None, None]
    sca = v * g
    cat = jnp.concatenate([sca.max(axis=1, keepdims=True),
                           sca.mean(axis=1, keepdims=True)], axis=1)
    s = dw(cat, p["c0_w"], p["c0_b"], 5, 1, 2)
    s = dw(s, p["cs_w"], p["cs_b"], 5, 3, 6)
    att = pw(s, p["wc1"].reshape(1, 2), p["bc1"])
    o = att * sca

    h = _gelu(pw(inst_norm(o), p["w3"], p["b3"]))
    z = pw(h, p["w4"], p["b4"])
    return x + p["beta"].reshape(1, C, 1, 1) * z


# -----------------------------------------------------------------------------
# deterministic parameter init (shapes from large_kernel.__init__ / CSA.__init__;
# 1x1 conv weights as (Cout, Cin), depthwise KxK weights flattened to (Cg, K*K)
# with tap index ki*K + kj, biases as (Cout, 1))
# -----------------------------------------------------------------------------
def init_params(key, C):
    Co = 2 * C
    ks = jax.random.split(key, 20)

    def rnd(k, shape, s=0.2):
        return s * jax.random.normal(k, shape, jnp.float32)

    return dict(
        w1=rnd(ks[0], (Co, C)),        b1=rnd(ks[1], (Co, 1)),
        lk_w=rnd(ks[2], (Co, 9)),      lk_b=rnd(ks[3], (Co, 1)),
        c2_w=rnd(ks[4], (Co, 9)),      c2_b=rnd(ks[5], (Co, 1)),
        wsca=rnd(ks[6], (Co, Co)),     bsca=rnd(ks[7], (Co, 1)),
        c0_w=rnd(ks[8], (2, 25)),      c0_b=rnd(ks[9], (2, 1)),
        cs_w=rnd(ks[10], (2, 25)),     cs_b=rnd(ks[11], (2, 1)),
        wc1=rnd(ks[12], (2, 1)),       bc1=rnd(ks[13], (1, 1)),
        w3=rnd(ks[14], (Co, Co)),      b3=rnd(ks[15], (Co, 1)),
        w4=rnd(ks[16], (C, Co)),       b4=rnd(ks[17], (C, 1)),
        # beta is zero-initialized in the PyTorch module (out == inp at init);
        # a nonzero deterministic value is used so the full path is exercised.
        beta=rnd(ks[18], (C, 1)),
        # gamma exists in the module but is unused in forward(); omitted.
    )


if __name__ == "__main__":
    N, C, H, W = 2, 4, 16, 16
    key = jax.random.PRNGKey(0)
    kx, kp = jax.random.split(key)
    x = jax.random.normal(kx, (N, C, H, W), jnp.float32)
    params = init_params(kp, C)

    _roll_matches_np()                 # resolve roll convention before tracing

    out = jax.block_until_ready(jax.jit(large_kernel_forward)(x, params))
    assert out.shape == (N, C, H, W) and out.dtype == jnp.float32
    assert bool(jnp.all(jnp.isfinite(out)))

    # self-check against the pure-JAX/XLA reference
    ref = jax.block_until_ready(jax.jit(large_kernel_reference)(x, params))
    np.testing.assert_allclose(np.asarray(out), np.asarray(ref),
                               rtol=2e-2, atol=2e-2)
    print("KERNEL_OK")
</pallas_src>

<mosaic_0001>
module attributes {stable_mosaic.version = 11 : i64} {
  func.func @k(%arg0: memref<8x128xf32, #tpu.memory_space<vmem>>, %arg1: memref<8x128xf32, #tpu.memory_space<vmem>>) attributes {dimension_semantics = [], scalar_prefetch = 0 : i64, scratch_operands = 0 : i64, tpu.core_type = #tpu.core_type<tc>} {
    %c0 = arith.constant 0 : index
    %c0_0 = arith.constant 0 : index
    %0 = vector.load %arg0[%c0, %c0_0] : memref<8x128xf32, #tpu.memory_space<vmem>>, vector<8x128xf32>
    %c1_i32 = arith.constant 1 : i32
    %1 = tpu.dynamic_rotate %0 by %c1_i32 dim 1 : vector<8x128xf32>, i32 -> vector<8x128xf32>
    %c0_1 = arith.constant 0 : index
    %c0_2 = arith.constant 0 : index
    %2 = vector.load %arg1[%c0_1, %c0_2] : memref<8x128xf32, #tpu.memory_space<vmem>>, vector<8x128xf32>
    tpu.vector_store %arg1[%c0_1, %c0_2], %1 {strides = array<i32>} : memref<8x128xf32, #tpu.memory_space<vmem>>, vector<8x128xf32>,
    return
  }
}

</mosaic_0001>

<bundles_post_ra>
// kernel: tpu_custom_call.1
= control target key start
LH: loop header
LB: loop body
LE: loop exit
PB: predicated region body
PF: predicated region fallthrough
CT: control target
= control target key end

     0   :  { %6 = vsyncpa [#allocation3], 0  ;;  %s106_s0 = inlined_call_operand.hbm [shape: f32[8,128], index: 0, kind: input, shape index: {}]   ;;  %s107_s1 = inlined_call_operand.hbm [shape: f32[8,128], index: 1, kind: output, shape index: {}]  }
   0x1   :  { %7 = vsyncpa [#allocation4], 0  ;;  %s87_s6 = smov [#allocation2]  }
   0x2   :  { %s14_s7 = sshll.u32 %s87_s6, 4  ;;  %s15_s7 = int_to_ptr.vmem [resolvable:$true] %s14_s7 }
   0x3   :  { %s51_s8 = scalar_lea.vmem %s15_s7, 128  ;;  %p56_p1 = scmp.lt.s32.totalorder %s15_s7, %s15_s7 }
   0x4   :  { %p52_p0 = scmp.ne.s32.totalorder %s15_s7, %s51_s8  ;;  %p57_p2 = scmp.lt.s32.totalorder %s51_s8, %s51_s8 }
   0x6   :  { %p58_p3 = por %p57_p2, %p56_p1 }
   0x8   :  { %p59_p4 = pnand %p58_p3, %p52_p0 }
   0xa   :  { %62 = shalt.err (!%p59_p4)
}
   0xb   :  { %17 = dma.hbm_to_vmem [thread:$0]  %s106_s0, 128, %s15_s7, [#allocation3]  }
   0xc   :  { %83 = dma.done.wait [#allocation3], 128  }
   0xd   :  { %84 = vsyncadd [#allocation3], 4294967168  ;;  %v21_v0 = vld [vmem:[#allocation2] sm:$0xff]  ;;  %s88_s11 = smov 1   ;;  %s89_s12 = smov [#allocation5]  }
   0xe   :  { %22 = vrot.lane.b32.xlu0 %v21_v0, %s88_s11  ;;  %s31_s13 = sshll.u32 %s89_s12, 4  ;;  %s32_s13 = int_to_ptr.vmem [resolvable:$true] %s31_s13 }
   0xf   :  { %s63_s14 = scalar_lea.vmem %s32_s13, 128  ;;  %p68_p6 = scmp.lt.s32.totalorder %s32_s13, %s32_s13 }
  0x10   :  { %p64_p5 = scmp.ne.s32.totalorder %s32_s13, %s63_s14  ;;  %p69_p7 = scmp.lt.s32.totalorder %s63_s14, %s63_s14 }
  0x12   :  { %p70_p8 = por %p69_p7, %p68_p6 }
  0x14   :  { %p71_p9 = pnand %p70_p8, %p64_p5 }
  0x80   :  { %v23_v1 = vpop.permute.xlu0 %22 }
  0x81   :  { %24 = vst [vmem:[#allocation5] sm:$0xff] %v23_v1 }
  0x82   :  { %74 = shalt.err (!%p71_p9)
}
  0x83   :  { %34 = dma.vmem_to_hbm [thread:$0]  %s32_s13, 128, %s107_s1, [#allocation4]  }
  0x84   :  { %85 = dma.done.wait [#allocation4], 128  }
  0x85   :  { %86 = vsyncadd [#allocation4], 4294967168 }
  0x86   :  { %38 = vsyncpa [#allocation3], 1 }
  0x87   :  { %39 = vsyncpa [#allocation4], 1 }

</bundles_post_ra>
